<compile_context>
chip_gen: v5e
topology: v5e:2x2
jax: 0.10.0
libtpu: 0.0.40
codegen_flags: <defaults>
</compile_context>

<pallas_src>
import jax
import jax.numpy as jnp
from jax.experimental import pallas as pl
from jax.experimental.pallas import tpu as pltpu

_VMEM_BLOCK_BUDGET = 6 * 1024 * 1024   # target bytes per logits block (per buffer)
_VMEM_LIMIT_BYTES = 32 * 1024 * 1024   # safe on v5e/v6e (128 MiB) and v7x (64 MiB)


def _sublane_multiple(dtype):
    # f32 -> 8, bf16 -> 16, int8/fp8 -> 32 (packed sublane tiling).
    return max(8, 32 // jnp.dtype(dtype).itemsize)


# --------------------------------------------------------------------------
# Kernel A: 2-D logits (rows, C) — rows on sublanes, classes on lanes.
# --------------------------------------------------------------------------
def _ce_rows_kernel(tgt_ref, logits_ref, loss_ref):
    x = logits_ref[...].astype(jnp.float32)               # (tile_r, C)
    t = tgt_ref[...]                                       # (tile_r, 1) int32
    m = jnp.max(x, axis=1, keepdims=True)                  # (tile_r, 1)
    lse = m + jnp.log(jnp.sum(jnp.exp(x - m), axis=1, keepdims=True))
    cls = jax.lax.broadcasted_iota(jnp.int32, x.shape, 1)  # class index per lane
    picked = jnp.sum(jnp.where(cls == t, x, 0.0), axis=1, keepdims=True)
    loss_ref[...] = lse - picked


def _ce_2d(logits2d, tgt_i32):
    rows, num_classes = logits2d.shape
    itemsize = jnp.dtype(logits2d.dtype).itemsize

    # Tile rows so one logits block is ~_VMEM_BLOCK_BUDGET (lane dim pads to 128).
    c_lanes = pl.cdiv(num_classes, 128) * 128
    max_rows = max(8, _VMEM_BLOCK_BUDGET // (c_lanes * 4))
    sub = _sublane_multiple(logits2d.dtype)
    if rows <= max_rows or rows <= sub:
        tile_r = rows                                  # full dim: exempt from /8 rule
    else:
        tile_r = max(sub, (min(max_rows, rows) // sub) * sub)
    grid = (pl.cdiv(rows, tile_r),)

    tgt2d = tgt_i32.reshape(rows, 1)
    cost = pl.CostEstimate(
        flops=6 * rows * num_classes,
        transcendentals=rows * (num_classes + 1),
        bytes_accessed=rows * num_classes * itemsize + 2 * rows * 4,
    )

    losses = pl.pallas_call(
        _ce_rows_kernel,
        out_shape=jax.ShapeDtypeStruct((rows, 1), jnp.float32),
        grid_spec=pltpu.PrefetchScalarGridSpec(
            num_scalar_prefetch=0,
            grid=grid,
            in_specs=[
                pl.BlockSpec((tile_r, 1), lambda r: (r, 0)),
                pl.BlockSpec((tile_r, num_classes), lambda r: (r, 0)),
            ],
            out_specs=pl.BlockSpec((tile_r, 1), lambda r: (r, 0)),
        ),
        compiler_params=pltpu.CompilerParams(
            dimension_semantics=("parallel",),
            vmem_limit_bytes=_VMEM_LIMIT_BYTES,
        ),
        cost_estimate=cost,
    )(tgt2d, logits2d)
    return jnp.mean(losses)


# --------------------------------------------------------------------------
# Kernel B: N-D logits (N, C, S) — classes on sublanes, spatial on lanes.
# --------------------------------------------------------------------------
def _ce_spatial_kernel(tgt_ref, logits_ref, loss_ref):
    x = logits_ref[...].astype(jnp.float32)               # (1, C, tile_s)
    t = tgt_ref[...]                                       # (1, 1, tile_s) int32
    m = jnp.max(x, axis=1, keepdims=True)                  # (1, 1, tile_s)
    lse = m + jnp.log(jnp.sum(jnp.exp(x - m), axis=1, keepdims=True))
    cls = jax.lax.broadcasted_iota(jnp.int32, x.shape, 1)  # class index per sublane
    picked = jnp.sum(jnp.where(cls == t, x, 0.0), axis=1, keepdims=True)
    loss_ref[...] = lse - picked                            # lane-dense (1,1,tile_s)


def _ce_nd(logits, tgt_i32):
    n, num_classes = logits.shape[0], logits.shape[1]
    spatial = 1
    for d in logits.shape[2:]:
        spatial *= d
    itemsize = jnp.dtype(logits.dtype).itemsize

    logits3 = logits.reshape(n, num_classes, spatial)       # contiguous: free
    tgt3 = tgt_i32.reshape(n, 1, spatial)

    # Tile spatial so one logits block is ~_VMEM_BLOCK_BUDGET (sublanes pad to 8).
    c_sub = pl.cdiv(num_classes, 8) * 8
    max_s = max(128, _VMEM_BLOCK_BUDGET // (c_sub * 4))
    if spatial <= max_s:
        tile_s = spatial                                     # full dim: exempt
    else:
        tile_s = max(128, (max_s // 128) * 128)
    grid = (n, pl.cdiv(spatial, tile_s))

    cost = pl.CostEstimate(
        flops=6 * n * spatial * num_classes,
        transcendentals=n * spatial * (num_classes + 1),
        bytes_accessed=n * spatial * num_classes * itemsize + 2 * n * spatial * 4,
    )

    losses = pl.pallas_call(
        _ce_spatial_kernel,
        out_shape=jax.ShapeDtypeStruct((n, 1, spatial), jnp.float32),
        grid_spec=pltpu.PrefetchScalarGridSpec(
            num_scalar_prefetch=0,
            grid=grid,
            in_specs=[
                pl.BlockSpec((1, 1, tile_s), lambda b, s: (b, 0, s)),
                pl.BlockSpec((1, num_classes, tile_s), lambda b, s: (b, 0, s)),
            ],
            out_specs=pl.BlockSpec((1, 1, tile_s), lambda b, s: (b, 0, s)),
        ),
        compiler_params=pltpu.CompilerParams(
            dimension_semantics=("parallel", "parallel"),
            vmem_limit_bytes=_VMEM_LIMIT_BYTES,
        ),
        cost_estimate=cost,
    )(tgt3, logits3)
    return jnp.mean(losses)


@jax.jit
def cross_entropy_loss(net_output, target):
    """Pallas implementation of nn.CrossEntropyLoss()(net_output, target.long()).

    net_output: (N, C) or (N, C, *spatial) logits.
    target:     (N,)   or (N, *spatial) class indices (any real dtype; cast to int).
    Returns a scalar float32 loss (mean reduction).
    """
    tgt_i32 = target.astype(jnp.int32)       # mirrors target.long()
    if net_output.ndim == 2:
        return _ce_2d(net_output, tgt_i32)
    return _ce_nd(net_output, tgt_i32)


def _reference_cross_entropy(net_output, target):
    if net_output.ndim > 2:
        lg = jnp.moveaxis(net_output, 1, -1).reshape(-1, net_output.shape[1])
    else:
        lg = net_output
    lg = lg.astype(jnp.float32)
    tgt = target.reshape(-1).astype(jnp.int32)
    lse = jax.scipy.special.logsumexp(lg, axis=1)
    picked = jnp.take_along_axis(lg, tgt[:, None], axis=1)[:, 0]
    return jnp.mean(lse - picked)


if __name__ == "__main__":
    key = jax.random.PRNGKey(0)
    k1, k2, k3, k4 = jax.random.split(key, 4)

    # Case 1: plain classification logits (batch, classes), int targets.
    n, c = 8, 32
    logits2d = jax.random.normal(k1, (n, c), jnp.float32)
    target2d = jax.random.randint(k2, (n,), 0, c, dtype=jnp.int32)
    loss2d = jax.block_until_ready(cross_entropy_loss(logits2d, target2d))
    ref2d = _reference_cross_entropy(logits2d, target2d)
    assert jnp.allclose(loss2d, ref2d, atol=1e-5, rtol=1e-5), (loss2d, ref2d)

    # Case 2: segmentation-style logits (N, C, D, H, W), per-voxel float targets
    # (exercises the `.long()`-style cast in the wrapper).
    n, c, d, h, w = 2, 4, 4, 8, 8
    logits5d = jax.random.normal(k3, (n, c, d, h, w), jnp.float32)
    target5d = jax.random.randint(k4, (n, d, h, w), 0, c).astype(jnp.float32)
    loss5d = jax.block_until_ready(cross_entropy_loss(logits5d, target5d))
    ref5d = _reference_cross_entropy(logits5d, target5d)
    assert jnp.allclose(loss5d, ref5d, atol=1e-5, rtol=1e-5), (loss5d, ref5d)

    print("KERNEL_OK")
</pallas_src>

<mosaic_0001>
module attributes {stable_mosaic.version = 11 : i64} {
  func.func @_ce_rows_kernel(%arg0: i32, %arg1: memref<8x1xi32, #tpu.memory_space<vmem>>, %arg2: memref<8x32xf32, #tpu.memory_space<vmem>>, %arg3: memref<8x1xf32, #tpu.memory_space<vmem>>) attributes {dimension_semantics = [#tpu.dimension_semantics<parallel>], iteration_bounds = array<i64: 1>, scalar_prefetch = 0 : i64, scratch_operands = 0 : i64, tpu.core_type = #tpu.core_type<tc>, window_params = [{transform_indices = @transform_0, window_bounds = array<i64: 8, 1>}, {transform_indices = @transform_1, window_bounds = array<i64: 8, 32>}, {transform_indices = @transform_2, window_bounds = array<i64: 8, 1>}]} {
    %c0 = arith.constant 0 : index
    %c0_0 = arith.constant 0 : index
    %0 = vector.load %arg2[%c0, %c0_0] : memref<8x32xf32, #tpu.memory_space<vmem>>, vector<8x32xf32>
    %c0_1 = arith.constant 0 : index
    %c0_2 = arith.constant 0 : index
    %1 = vector.load %arg1[%c0_1, %c0_2] : memref<8x1xi32, #tpu.memory_space<vmem>>, vector<8x1xi32>
    %cst = arith.constant dense<0xFF800000> : vector<8xf32>
    %2 = vector.multi_reduction <maximumf>, %0, %cst [1] : vector<8x32xf32> to vector<8xf32>
    %3 = vector.shape_cast %2 : vector<8xf32> to vector<8x1xf32>
    %4 = vector.broadcast %3 : vector<8x1xf32> to vector<8x32xf32>
    %5 = arith.subf %0, %4 : vector<8x32xf32>
    %6 = math.exp %5 : vector<8x32xf32>
    %cst_3 = arith.constant dense<0.000000e+00> : vector<8xf32>
    %7 = vector.multi_reduction <add>, %6, %cst_3 [1] : vector<8x32xf32> to vector<8xf32>
    %8 = vector.shape_cast %7 : vector<8xf32> to vector<8x1xf32>
    %9 = math.log %8 : vector<8x1xf32>
    %10 = arith.addf %3, %9 : vector<8x1xf32>
    %11 = tpu.iota {dimensions = array<i32: 1>} : vector<8x32xi32>
    %12 = vector.broadcast %1 : vector<8x1xi32> to vector<8x32xi32>
    %13 = arith.cmpi eq, %11, %12 : vector<8x32xi32>
    %cst_4 = arith.constant 0.000000e+00 : f32
    %14 = vector.broadcast %cst_4 : f32 to vector<8x32xf32>
    %15 = arith.select %13, %0, %14 : vector<8x32xi1>, vector<8x32xf32>
    %cst_5 = arith.constant dense<0.000000e+00> : vector<8xf32>
    %16 = vector.multi_reduction <add>, %15, %cst_5 [1] : vector<8x32xf32> to vector<8xf32>
    %17 = vector.shape_cast %16 : vector<8xf32> to vector<8x1xf32>
    %18 = arith.subf %10, %17 : vector<8x1xf32>
    %c0_6 = arith.constant 0 : index
    %c0_7 = arith.constant 0 : index
    %19 = vector.load %arg3[%c0_6, %c0_7] : memref<8x1xf32, #tpu.memory_space<vmem>>, vector<8x1xf32>
    tpu.vector_store %arg3[%c0_6, %c0_7], %18 {strides = array<i32>} : memref<8x1xf32, #tpu.memory_space<vmem>>, vector<8x1xf32>,
    return
  }
  func.func @transform_0(%arg0: i32) -> (i32, i32) {
    %c0_i32 = arith.constant 0 : i32
    %c0_i32_0 = arith.constant 0 : i32
    return %arg0, %c0_i32 : i32, i32
  }
  func.func @transform_1(%arg0: i32) -> (i32, i32) {
    %c0_i32 = arith.constant 0 : i32
    %c0_i32_0 = arith.constant 0 : i32
    return %arg0, %c0_i32 : i32, i32
  }
  func.func @transform_2(%arg0: i32) -> (i32, i32) {
    %c0_i32 = arith.constant 0 : i32
    %c0_i32_0 = arith.constant 0 : i32
    return %arg0, %c0_i32 : i32, i32
  }
}

</mosaic_0001>

<bundles_post_ra>
// kernel: cross_entropy_loss.1
= control target key start
LH: loop header
LB: loop body
LE: loop exit
PB: predicated region body
PF: predicated region fallthrough
CT: control target
= control target key end

     0   :  { %vm13_vm0 = vcmask 261120   ;;  %v49_v1 = vmov 0   ;;  %v26_v9 = vlaneseq  ;;  %vm37_vm2 = vcmask 7168   ;;  %s77_s1 = inlined_call_operand.vmem [shape: f32[8,32], index: 1, kind: input, shape index: {}]   ;;  %s78_s0 = inlined_call_operand.vmem [shape: s32[8,1], index: 0, kind: input, shape index: {}]   ;;  %s79_s2 = inlined_call_operand.vmem [shape: f32[8,1], index: 2, kind: output, shape index: {}]  }
   0x1   :  { %v11_v0 = vld [vmem:[%s77_s1] sm:$0xff]  ;;  %44 = vset.pattern.permute.xlu0 %v49_v1 }
   0x2   :  { %v14_v2 = vsel %vm13_vm0, %v11_v0, -inf  ;;  %v12_v3 = vld [vmem:[%s78_s0] sm:$0xff]  ;;  %v27_v10 = vand.u32 127, %v26_v9 }
   0x3   :  { %15 = vmax.xlane.f32.xlu0 %v14_v2 }
  0x17   :  { %29 = vperm.xlu0 %44, %v12_v3  }
  0x76   :  { %v16_v4 = vpop.xlane.xlu0 %15 }
  0x77   :  { %v17_v5 = vsub.f32 %v11_v0, %v16_v4 }
  0x79   :  { %v18_v6 = vmul.f32 1.442695, %v17_v5 }
  0x7b   :  { %45 = vpow2.f32 %v18_v6 }
  0x81   :  { %v46_v7 = vpop.eup %45 }
  0x82   :  { %v20_v8 = vsel %vm13_vm0, %v46_v7, 0.0 }
  0x83   :  { %21 = vadd.xlane.f32.xlu1 %v20_v8 }
  0x89   :  { %v30_v11 = vpop.permute.xlu0 %29 }
  0x8a   :  { %vm31_vm1 = vcmp.eq.s32.totalorder %v27_v10, %v30_v11 }
  0x8b   :  { %v32_v12 = vsel %vm31_vm1, %v11_v0, 0.0 }
  0x8c   :  { %v33_v13 = vsel %vm13_vm0, %v32_v12, 0.0 }
  0x8d   :  { %34 = vadd.xlane.f32.xlu1 %v33_v13 }
  0xf6   :  { %v22_v14 = vpop.xlane.xlu1 %21 }
  0xf7   :  { %47 = vlog2.f32 %v22_v14 }
  0xfd   :  { %v48_v15 = vpop.eup %47 }
  0xfe   :  { %v24_v16 = vmul.f32 0.6931472, %v48_v15 }
 0x100   :  { %v25_v17 = vadd.f32 %v24_v16, %v16_v4  ;;  %v35_v18 = vpop.xlane.xlu1 %34 }
 0x102   :  { %v36_v19 = vsub.f32 %v25_v17, %v35_v18 }
 0x104   :  { %38 = vst.msk [vmem:[%s79_s2] sm:$0xff] %vm37_vm2, %v36_v19 }

</bundles_post_ra>
